<compile_context>
chip_gen: v7x
topology: tpu7x:2x2x1
jax: 0.10.0
libtpu: 0.0.40
codegen_flags: <defaults>
</compile_context>

<pallas_src>
import functools

import jax
import jax.numpy as jnp
from jax.experimental import pallas as pl
from jax.experimental.pallas import tpu as pltpu


def _round_up(n, m):
    return (n + m - 1) // m * m


def _pad_dim(d, mxu_align=128):
    # Lane alignment is always >= 128. Passing mxu_align=256 rounds *large*
    # dims to 256 to fill the 256x256 MXU on v6e/v7x (keep 128 on v5e).
    align = mxu_align if d >= mxu_align else 128
    return _round_up(d, max(128, align))


def _mlp_kernel(x_ref, p_ref, o_ref, *, dims_pad):
    """Full MLP on one (tile_b, obs_pad) batch tile.

    p_ref is the packed parameter slab (one DMA, VMEM-resident):
      rows [0 .. sum(dims_pad[:-1]))        : stacked (padded) weight matrices
      rows [sum(dims_pad[:-1]) .. +n_lin)   : one bias row per linear layer
    Weight row offsets are multiples of 128, so slices are tile-aligned views.
    """
    n_lin = len(dims_pad) - 1
    bias_row = sum(dims_pad[:-1])
    dot_dtype = p_ref.dtype

    h = x_ref[...]                                   # (tile_b, obs_pad)
    row = 0
    for i in range(n_lin):                           # static -> straight-line
        k, n = dims_pad[i], dims_pad[i + 1]
        w = p_ref[pl.ds(row, k), pl.ds(0, n)]                 # (k, n)
        b = p_ref[pl.ds(bias_row + i, 1), pl.ds(0, n)]        # (1, n)
        # f32 accumulate on the MXU. For bit-level parity with an f32 CPU/torch
        # reference, add precision=jax.lax.Precision.HIGHEST (~3x MXU passes).
        y = jnp.dot(h.astype(dot_dtype), w,
                    preferred_element_type=jnp.float32) + b
        h = jnp.maximum(y, 0.0) if i < n_lin - 1 else y
        row += k

    o_ref[...] = h.astype(o_ref.dtype)               # lane-dense store


def pack_params(layer_params, dims, *, dtype=jnp.float32, mxu_align=128):
    """Pad every weight/bias to lane-aligned tiles and pack into ONE slab."""
    dims_pad = tuple(_pad_dim(d, mxu_align) for d in dims)
    width = max(dims_pad[1:])
    n_lin = len(dims) - 1

    blocks = []
    for i, (w, _) in enumerate(layer_params):
        w = w.astype(dtype)
        blocks.append(jnp.pad(w, ((0, dims_pad[i] - w.shape[0]),
                                  (0, width - w.shape[1]))))
    bias = jnp.zeros((_round_up(n_lin, 8), width), dtype)   # sublane-aligned
    for i, (_, b) in enumerate(layer_params):
        b = b.astype(dtype)
        bias = bias.at[i, : b.shape[0]].set(b)
    blocks.append(bias)
    return jnp.concatenate(blocks, axis=0), dims_pad


def _make_slab_spec(n_rows, width):
    # Constant index_map -> same block every grid step; single-buffer it so it
    # doesn't waste VMEM on a second copy. Fall back gracefully on older jax.
    try:
        return pl.BlockSpec((n_rows, width), lambda i: (0, 0),
                            pipeline_mode=pl.Buffered(1))
    except (AttributeError, TypeError):
        return pl.BlockSpec((n_rows, width), lambda i: (0, 0))


def mlp_forward(x, slab, dims_pad):
    """x: (batch, obs_dim). Returns the lane-dense (batch, out_pad) result."""
    batch, obs_dim = x.shape
    obs_pad, out_pad = dims_pad[0], dims_pad[-1]
    dtype = slab.dtype

    x = x.astype(dtype)
    # Feature-dim zero pad only when needed (single fused op). Zeroing is
    # load-bearing: padded lanes multiply zero-padded weight rows, never NaN.
    if obs_dim != obs_pad:
        x = jnp.pad(x, ((0, 0), (0, obs_pad - obs_dim)))

    # No batch padding: cdiv grid, Pallas masks the ragged last block.
    # tile_b: >=2 grid steps once batch > 8 (both v7x TensorCores get work),
    # capped at 2048 rows (~1 MiB/buffer) for large batches.
    tile_b = max(8, min(2048, _round_up(pl.cdiv(batch, 2), 8)))
    grid = (pl.cdiv(batch, tile_b),)

    n_rows, width = slab.shape
    itemsize = jnp.dtype(dtype).itemsize
    # Conservative budget: slab (x2 worst case) + double-buffered x/out tiles
    # + headroom. Only ever raises the default scoped limit; capped at 64 MiB
    # (v7x physical).
    vmem_need = (2 * n_rows * width
                 + 2 * tile_b * obs_pad
                 + 2 * tile_b * out_pad) * itemsize
    vmem_limit = int(min(64 << 20, max(32 << 20, vmem_need + (8 << 20))))

    out = pl.pallas_call(
        functools.partial(_mlp_kernel, dims_pad=dims_pad),
        out_shape=jax.ShapeDtypeStruct((batch, out_pad), dtype),
        grid_spec=pltpu.PrefetchScalarGridSpec(
            num_scalar_prefetch=0,
            grid=grid,
            in_specs=[
                # x: one batch tile per grid step (auto double-buffered)
                pl.BlockSpec((tile_b, obs_pad), lambda i: (i, 0)),
                # packed params: constant block, single-buffered, VMEM-resident
                _make_slab_spec(n_rows, width),
            ],
            out_specs=pl.BlockSpec((tile_b, out_pad), lambda i: (i, 0)),
        ),
        compiler_params=pltpu.CompilerParams(
            dimension_semantics=("parallel",),   # shard batch across TCs (v7x)
            vmem_limit_bytes=vmem_limit,
        ),
    )(x, slab)
    return out


def function_forward(x_obs, slab, *, dims_pad, output_shape, output_len):
    """Equivalent of Function.forward: flatten -> MLP -> Unflatten(1, shape)."""
    batch = x_obs.shape[0]
    x_flat = x_obs.reshape(batch, -1)                      # flatten extractor
    out_pad_full = mlp_forward(x_flat, slab, dims_pad)     # (batch, out_pad)
    # Column slice + Unflatten fused into the single consumer op.
    return out_pad_full[:, :output_len].reshape((batch,) + tuple(output_shape))


def init_params(key, dims):
    """Kaiming-uniform-ish init matching torch Linear shapes, stored as (in, out)."""
    keys = jax.random.split(key, 2 * (len(dims) - 1))
    params = []
    for i in range(len(dims) - 1):
        fan_in, fan_out = dims[i], dims[i + 1]
        bound = 1.0 / (fan_in ** 0.5)
        w = jax.random.uniform(keys[2 * i], (fan_in, fan_out), jnp.float32, -bound, bound)
        b = jax.random.uniform(keys[2 * i + 1], (fan_out,), jnp.float32, -bound, bound)
        params.append((w, b))
    return params


if __name__ == "__main__":
    # args.hidden = 32, args.layers = 2 (one hidden Linear+ReLU after the first)
    # observation_space shape = (4, 8) -> obs_dim = 32
    # output_shape = (2, 4)            -> output_len = 8
    batch = 8
    obs_shape = (4, 8)
    obs_dim = 4 * 8
    hidden = 32
    layers = 2
    output_shape = (2, 4)
    output_len = 8
    dims = (obs_dim,) + (hidden,) * layers + (output_len,)

    key = jax.random.PRNGKey(0)
    k_x, k_p = jax.random.split(key)
    x = jax.random.normal(k_x, (batch,) + obs_shape, jnp.float32)

    layer_params = init_params(k_p, dims)

    # Pure-JAX reference (unpadded math).
    def ref(x_obs, params):
        h = x_obs.reshape(x_obs.shape[0], -1)
        for i, (w, b) in enumerate(params):
            h = h @ w + b
            if i < len(params) - 1:
                h = jnp.maximum(h, 0.0)
        return h.reshape((x_obs.shape[0],) + output_shape)

    ref_out = ref(x, layer_params)

    # ---- f32 parity path -------------------------------------------------
    slab_f32, dims_pad = pack_params(layer_params, dims, dtype=jnp.float32)
    fwd_f32 = jax.jit(functools.partial(
        function_forward, dims_pad=dims_pad,
        output_shape=output_shape, output_len=output_len))
    out_f32 = fwd_f32(x, slab_f32)
    jax.block_until_ready(out_f32)
    assert out_f32.shape == (batch,) + output_shape, out_f32.shape
    assert jnp.allclose(out_f32, ref_out, atol=1e-4, rtol=1e-4), (
        float(jnp.max(jnp.abs(out_f32 - ref_out))))

    # ---- bf16 weight/activation path (v6e/v7x DMA + MXU lever) -----------
    slab_bf16, dims_pad_bf16 = pack_params(layer_params, dims, dtype=jnp.bfloat16)
    fwd_bf16 = jax.jit(functools.partial(
        function_forward, dims_pad=dims_pad_bf16,
        output_shape=output_shape, output_len=output_len))
    out_bf16 = fwd_bf16(x, slab_bf16)
    jax.block_until_ready(out_bf16)
    assert out_bf16.shape == (batch,) + output_shape, out_bf16.shape
    assert jnp.allclose(out_bf16.astype(jnp.float32), ref_out,
                        atol=1e-1, rtol=1e-1), (
        float(jnp.max(jnp.abs(out_bf16.astype(jnp.float32) - ref_out))))

    print("KERNEL_OK")
</pallas_src>

<mosaic_0001>
module attributes {stable_mosaic.version = 11 : i64} {
  func.func @_mlp_kernel(%arg0: i32, %arg1: memref<8x128xf32, #tpu.memory_space<vmem>>, %arg2: memref<392x128xf32, #tpu.memory_space<vmem>>, %arg3: memref<8x128xf32, #tpu.memory_space<vmem>>) attributes {dimension_semantics = [#tpu.dimension_semantics<parallel>], iteration_bounds = array<i64: 1>, scalar_prefetch = 0 : i64, scratch_operands = 0 : i64, tpu.core_type = #tpu.core_type<tc>, window_params = [{transform_indices = @transform_0, window_bounds = array<i64: 8, 128>}, {pipeline_mode = #tpu.pipeline_mode<synchronous>, transform_indices = @transform_1, window_bounds = array<i64: 392, 128>}, {transform_indices = @transform_2, window_bounds = array<i64: 8, 128>}]} {
    %c0 = arith.constant 0 : index
    %c0_0 = arith.constant 0 : index
    %0 = vector.load %arg1[%c0, %c0_0] : memref<8x128xf32, #tpu.memory_space<vmem>>, vector<8x128xf32>
    %c0_1 = arith.constant 0 : index
    %c0_2 = arith.constant 0 : index
    %1 = vector.load %arg2[%c0_1, %c0_2] : memref<392x128xf32, #tpu.memory_space<vmem>>, vector<128x128xf32>
    %c384 = arith.constant 384 : index
    %c0_3 = arith.constant 0 : index
    %2 = vector.load %arg2[%c384, %c0_3] : memref<392x128xf32, #tpu.memory_space<vmem>>, vector<1x128xf32>
    %cst = arith.constant dense<0.000000e+00> : vector<8x128xf32>
    %3 = tpu.matmul %0, %1, %cst {dimension_numbers = #tpu.dot_dimension_numbers<[1], [0], [0], [1], [0, 0, 1, 1], [], []>} : vector<8x128xf32>, vector<128x128xf32>, vector<8x128xf32> -> vector<8x128xf32>
    %4 = vector.broadcast %2 : vector<1x128xf32> to vector<8x128xf32>
    %5 = arith.addf %3, %4 : vector<8x128xf32>
    %cst_4 = arith.constant 0.000000e+00 : f32
    %6 = vector.broadcast %cst_4 : f32 to vector<8x128xf32>
    %7 = arith.maximumf %5, %6 : vector<8x128xf32>
    %c128 = arith.constant 128 : index
    %c0_5 = arith.constant 0 : index
    %8 = vector.load %arg2[%c128, %c0_5] : memref<392x128xf32, #tpu.memory_space<vmem>>, vector<128x128xf32>
    %c385 = arith.constant 385 : index
    %c0_6 = arith.constant 0 : index
    %9 = vector.load %arg2[%c385, %c0_6] : memref<392x128xf32, #tpu.memory_space<vmem>>, vector<1x128xf32>
    %cst_7 = arith.constant dense<0.000000e+00> : vector<8x128xf32>
    %10 = tpu.matmul %7, %8, %cst_7 {dimension_numbers = #tpu.dot_dimension_numbers<[1], [0], [0], [1], [0, 0, 1, 1], [], []>} : vector<8x128xf32>, vector<128x128xf32>, vector<8x128xf32> -> vector<8x128xf32>
    %11 = vector.broadcast %9 : vector<1x128xf32> to vector<8x128xf32>
    %12 = arith.addf %10, %11 : vector<8x128xf32>
    %cst_8 = arith.constant 0.000000e+00 : f32
    %13 = vector.broadcast %cst_8 : f32 to vector<8x128xf32>
    %14 = arith.maximumf %12, %13 : vector<8x128xf32>
    %c256 = arith.constant 256 : index
    %c0_9 = arith.constant 0 : index
    %15 = vector.load %arg2[%c256, %c0_9] : memref<392x128xf32, #tpu.memory_space<vmem>>, vector<128x128xf32>
    %c386 = arith.constant 386 : index
    %c0_10 = arith.constant 0 : index
    %16 = vector.load %arg2[%c386, %c0_10] : memref<392x128xf32, #tpu.memory_space<vmem>>, vector<1x128xf32>
    %cst_11 = arith.constant dense<0.000000e+00> : vector<8x128xf32>
    %17 = tpu.matmul %14, %15, %cst_11 {dimension_numbers = #tpu.dot_dimension_numbers<[1], [0], [0], [1], [0, 0, 1, 1], [], []>} : vector<8x128xf32>, vector<128x128xf32>, vector<8x128xf32> -> vector<8x128xf32>
    %18 = vector.broadcast %16 : vector<1x128xf32> to vector<8x128xf32>
    %19 = arith.addf %17, %18 : vector<8x128xf32>
    %c0_12 = arith.constant 0 : index
    %c0_13 = arith.constant 0 : index
    %20 = vector.load %arg3[%c0_12, %c0_13] : memref<8x128xf32, #tpu.memory_space<vmem>>, vector<8x128xf32>
    tpu.vector_store %arg3[%c0_12, %c0_13], %19 {strides = array<i32>} : memref<8x128xf32, #tpu.memory_space<vmem>>, vector<8x128xf32>,
    return
  }
  func.func @transform_0(%arg0: i32) -> (i32, i32) {
    %c0_i32 = arith.constant 0 : i32
    %c0_i32_0 = arith.constant 0 : i32
    return %arg0, %c0_i32 : i32, i32
  }
  func.func @transform_1(%arg0: i32) -> (i32, i32) {
    %c0_i32 = arith.constant 0 : i32
    %c0_i32_0 = arith.constant 0 : i32
    %c0_i32_1 = arith.constant 0 : i32
    return %c0_i32, %c0_i32_0 : i32, i32
  }
  func.func @transform_2(%arg0: i32) -> (i32, i32) {
    %c0_i32 = arith.constant 0 : i32
    %c0_i32_0 = arith.constant 0 : i32
    return %arg0, %c0_i32 : i32, i32
  }
}

</mosaic_0001>

<bundles_post_ra>
// kernel: function_forward.1
= control target key start
LH: loop header
LB: loop body
LE: loop exit
PB: predicated region body
PF: predicated region fallthrough
CT: control target
= control target key end

     0   :  { %7 = vsyncpa [#allocation3], 0  ;;  %s568_s9 = smov [#allocation2]   ;;  %s637_s0 = inlined_call_operand.vmem [shape: f32[8,128], index: 0, kind: input, shape index: {}]   ;;  %s638_s1 = inlined_call_operand.hbm [shape: f32[392,128], index: 1, kind: input, shape index: {}]   ;;  %s639_s2 = inlined_call_operand.vmem [shape: f32[8,128], index: 2, kind: output, shape index: {}]  }
   0x1   :  { %s15_s10 = sshll.u32 %s568_s9, 4  ;;  %s544_s13 = scalar_lea.hbm %s638_s1, 6272  ;;  %s16_s10 = int_to_ptr.vmem [resolvable:$true] %s15_s10 }
   0x2   :  { %p545_p0 = scmp.ne.s32.totalorder %s638_s1, %s544_s13  ;;  %p548_p1 = scmp.lt.u32.totalorder %s544_s13, %s638_s1 }
   0x4   :  { %p550_p2 = pnand %p548_p1, %p545_p0 }
   0x6   :  { %553 = shalt.err (!%p550_p2)
}
   0x7   :  { %s554_s18 = scalar_lea.vmem %s16_s10, 6272  ;;  %p559_p4 = scmp.lt.s32.totalorder %s16_s10, %s16_s10 }
   0x8   :  { %p555_p3 = scmp.ne.s32.totalorder %s16_s10, %s554_s18  ;;  %p560_p5 = scmp.lt.s32.totalorder %s554_s18, %s554_s18 }
   0xa   :  { %p561_p6 = por %p560_p5, %p559_p4 }
   0xc   :  { %p562_p7 = pnand %p561_p6, %p555_p3 }
   0xe   :  { %565 = shalt.err (!%p562_p7)
}
   0xf   :  { %s569_s19 = smov 128   ;;  %s570_s20 = smov 8  }
  0x10   :  { %21 = dma.hbm_to_vmem [thread:$0]  %s638_s1, 6272, %s16_s10, [#allocation3], %s569_s19, %s569_s19, %s570_s20  }
  0x11   :  { %566 = dma.done.wait [#allocation3], 6272  }
  0x12   :  { %567 = vsyncadd [#allocation3], 4294961024  ;;  %v571_v0 = vmov 0.0|0.0   ;;  %vm572_vm0 = vmmov 0   ;;  %v573_v1 = vmov 0.0   ;;  %v26_v2 = vld [vmem:[#allocation2] sm:$0xff] }
  0x13   :  { %466 = vmatprep.subr.bf16.mxu0 %v571_v0  ;;  %393 = vmatprep.mubr.msk.f32.mxu0 %vm572_vm0, %v573_v1  ;;  %v27_v3 = vld [vmem:[#allocation2 + $0x8] sm:$0xff]  ;;  %v28_v4 = vld [vmem:[#allocation2 + $0x10] sm:$0xff]  ;;  %v29_v6 = vld [vmem:[#allocation2 + $0x18] sm:$0xff] }
  0x14   :  { %490 = vmatprep.subr.bf16.mxu1 %v571_v0  ;;  %428 = vmatprep.mubr.msk.f32.mxu1 %vm572_vm0, %v573_v1  ;;  %v467_v5 = vpack.c.bf16 %v27_v3, %v26_v2  ;;  %v470_v7 = vpack.c.bf16 %v29_v6, %v28_v4  ;;  %v30_v8 = vld [vmem:[#allocation2 + $0x20] sm:$0xff]  ;;  %v31_v9 = vld [vmem:[#allocation2 + $0x28] sm:$0xff]  ;;  %v120_v12 = vld [vmem:[#allocation2 + $0x90] sm:$0xff] }
  0x15   :  { %v118_v10 = vld [vmem:[#allocation2 + $0x80] sm:$0xff]  ;;  %v119_v11 = vld [vmem:[#allocation2 + $0x88] sm:$0xff]  ;;  %v121_v13 = vld [vmem:[#allocation2 + $0x98] sm:$0xff]  ;;  %v473_v14 = vpack.c.bf16 %v31_v9, %v30_v8 }
  0x16   :  { %468 = vmatpush3.bf16.msra.mxu0 %v467_v5  ;;  %v491_v15 = vpack.c.bf16 %v119_v11, %v118_v10  ;;  %v32_v16 = vld [vmem:[#allocation2 + $0x30] sm:$0xff]  ;;  %v33_v17 = vld [vmem:[#allocation2 + $0x38] sm:$0xff]  ;;  %v494_v18 = vpack.c.bf16 %v121_v13, %v120_v12  ;;  %v122_v19 = vld [vmem:[#allocation2 + $0xa0] sm:$0xff] }
  0x17   :  { %469 = vmatprep.subr.bf16.mxu0 %v571_v0  ;;  %v123_v20 = vld [vmem:[#allocation2 + $0xa8] sm:$0xff]  ;;  %v476_v21 = vpack.c.bf16 %v33_v17, %v32_v16  ;;  %v34_v22 = vld [vmem:[#allocation2 + $0x40] sm:$0xff]  ;;  %v124_v25 = vld [vmem:[#allocation2 + $0xb0] sm:$0xff] }
  0x18   :  { %492 = vmatpush3.bf16.msra.mxu1 %v491_v15  ;;  %v35_v23 = vld [vmem:[#allocation2 + $0x48] sm:$0xff]  ;;  %v497_v24 = vpack.c.bf16 %v123_v20, %v122_v19  ;;  %v125_v26 = vld [vmem:[#allocation2 + $0xb8] sm:$0xff]  ;;  %v36_v28 = vld [vmem:[#allocation2 + $0x50] sm:$0xff] }
  0x19   :  { %493 = vmatprep.subr.bf16.mxu1 %v571_v0  ;;  %v479_v27 = vpack.c.bf16 %v35_v23, %v34_v22  ;;  %v37_v29 = vld [vmem:[#allocation2 + $0x58] sm:$0xff]  ;;  %v500_v30 = vpack.c.bf16 %v125_v26, %v124_v25  ;;  %v126_v31 = vld [vmem:[#allocation2 + $0xc0] sm:$0xff]  ;;  %v127_v32 = vld [vmem:[#allocation2 + $0xc8] sm:$0xff] }
  0x1a   :  { %471 = vmatpush3.bf16.msra.mxu0 %v470_v7  ;;  %v482_v33 = vpack.c.bf16 %v37_v29, %v36_v28  ;;  %v38_v34 = vld [vmem:[#allocation2 + $0x60] sm:$0xff]  ;;  %v39_v35 = vld [vmem:[#allocation2 + $0x68] sm:$0xff]  ;;  %v503_v36 = vpack.c.bf16 %v127_v32, %v126_v31  ;;  %v128_v37 = vld [vmem:[#allocation2 + $0xd0] sm:$0xff] }
  0x1b   :  { %472 = vmatprep.subr.bf16.mxu0 %v571_v0  ;;  %v129_v38 = vld [vmem:[#allocation2 + $0xd8] sm:$0xff]  ;;  %v485_v39 = vpack.c.bf16 %v39_v35, %v38_v34  ;;  %v40_v40 = vld [vmem:[#allocation2 + $0x70] sm:$0xff]  ;;  %v130_v43 = vld [vmem:[#allocation2 + $0xe0] sm:$0xff] }
  0x1c   :  { %495 = vmatpush3.bf16.msra.mxu1 %v494_v18  ;;  %v41_v41 = vld [vmem:[#allocation2 + $0x78] sm:$0xff]  ;;  %v506_v42 = vpack.c.bf16 %v129_v38, %v128_v37  ;;  %v131_v44 = vld [vmem:[#allocation2 + $0xe8] sm:$0xff]  ;;  %v25_v47 = vld [vmem:[%s637_s0] sm:$0xff] }
  0x1d   :  { %496 = vmatprep.subr.bf16.mxu1 %v571_v0  ;;  %v488_v45 = vpack.c.bf16 %v41_v41, %v40_v40  ;;  %v509_v46 = vpack.c.bf16 %v131_v44, %v130_v43  ;;  %v132_v48 = vld [vmem:[#allocation2 + $0xf0] sm:$0xff]  ;;  %v133_v49 = vld [vmem:[#allocation2 + $0xf8] sm:$0xff]  ;;  %v210_v51 = vld [vmem:[#allocation2 + $0x100] sm:$0xff] }
  0x1e   :  { %474 = vmatpush3.bf16.msra.mxu0 %v473_v14  ;;  %v512_v50 = vpack.c.bf16 %v133_v49, %v132_v48  ;;  %v211_v52 = vld [vmem:[#allocation2 + $0x108] sm:$0xff]  ;;  %v212_v53 = vld [vmem:[#allocation2 + $0x110] sm:$0xff]  ;;  %v213_v55 = vld [vmem:[#allocation2 + $0x118] sm:$0xff] }
  0x1f   :  { %475 = vmatprep.subr.bf16.mxu0 %v571_v0  ;;  %v515_v54 = vpack.c.bf16 %v211_v52, %v210_v51  ;;  %v518_v56 = vpack.c.bf16 %v213_v55, %v212_v53  ;;  %v214_v57 = vld [vmem:[#allocation2 + $0x120] sm:$0xff]  ;;  %v215_v58 = vld [vmem:[#allocation2 + $0x128] sm:$0xff]  ;;  %v216_v60 = vld [vmem:[#allocation2 + $0x130] sm:$0xff] }
  0x20   :  { %498 = vmatpush3.bf16.msra.mxu1 %v497_v24  ;;  %v521_v59 = vpack.c.bf16 %v215_v58, %v214_v57  ;;  %v217_v61 = vld [vmem:[#allocation2 + $0x138] sm:$0xff]  ;;  %v218_v63 = vld [vmem:[#allocation2 + $0x140] sm:$0xff]  ;;  %v220_v3 = vld [vmem:[#allocation2 + $0x150] sm:$0xff] }
  0x21   :  { %499 = vmatprep.subr.bf16.mxu1 %v571_v0  ;;  %v524_v62 = vpack.c.bf16 %v217_v61, %v216_v60  ;;  %v221_v4 = vld [vmem:[#allocation2 + $0x158] sm:$0xff]  ;;  %v222_v6 = vld [vmem:[#allocation2 + $0x160] sm:$0xff]  ;;  %v223_v7 = vld [vmem:[#allocation2 + $0x168] sm:$0xff] }
  0x22   :  { %477 = vmatpush3.bf16.msra.mxu0 %v476_v21  ;;  %v530_v5 = vpack.c.bf16 %v221_v4, %v220_v3  ;;  %v533_v8 = vpack.c.bf16 %v223_v7, %v222_v6  ;;  %v307_v9 = vld [vmem:[#allocation2 + $0x180] ss:$0 sm:$0xff]  ;;  %v224_v14 = vld [vmem:[#allocation2 + $0x170] sm:$0xff]  ;;  %v225_v15 = vld [vmem:[#allocation2 + $0x178] sm:$0xff] }
  0x23   :  { %478 = vmatprep.subr.bf16.mxu0 %v571_v0  ;;  %v536_v16 = vpack.c.bf16 %v225_v15, %v224_v14  ;;  %v308_v17 = vld [vmem:[#allocation2 + $0x181] ss:$0 sm:$0xff]  ;;  %v309_v22 = vld [vmem:[#allocation2 + $0x182] ss:$0 sm:$0xff] }
  0x24   :  { %501 = vmatpush3.bf16.msra.mxu1 %v500_v30 }
  0x25   :  { %502 = vmatprep.subr.bf16.mxu1 %v571_v0 }
  0x26   :  { %480 = vmatpush3.bf16.msra.mxu0 %v479_v27 }
  0x27   :  { %481 = vmatprep.subr.bf16.mxu0 %v571_v0 }
  0x28   :  { %504 = vmatpush3.bf16.msra.mxu1 %v503_v36 }
  0x29   :  { %505 = vmatprep.subr.bf16.mxu1 %v571_v0 }
  0x2a   :  { %483 = vmatpush3.bf16.msra.mxu0 %v482_v33 }
  0x2b   :  { %484 = vmatprep.subr.bf16.mxu0 %v571_v0 }
  0x2c   :  { %507 = vmatpush3.bf16.msra.mxu1 %v506_v42 }
  0x2d   :  { %508 = vmatprep.subr.bf16.mxu1 %v571_v0 }
  0x2e   :  { %486 = vmatpush3.bf16.msra.mxu0 %v485_v39 }
  0x2f   :  { %487 = vmatprep.subr.bf16.mxu0 %v571_v0 }
  0x30   :  { %510 = vmatpush3.bf16.msra.mxu1 %v509_v46 }
  0x31   :  { %511 = vmatprep.subr.bf16.mxu1 %v571_v0 }
  0x32   :  { %489 = vmatpush3.bf16.msra.mxu0 %v488_v45 }
  0x33   :  { %514 = vmatprep.subr.bf16.mxu0 %v571_v0 }
  0x34   :  { %513 = vmatpush3.bf16.msra.mxu1 %v512_v50 }
  0x35   :  { %394 = vmatmul.mubr.f32.vlgmr.msra.gmra.mrb[0].mxu0 %v25_v47 }
  0x36   :  { %463 = vmatprep.mubr.msk.f32.mxu0 %vm572_vm0, %v573_v1  ;;  %516 = vmatpush3.bf16.msra.mxu0 %v515_v54  ;;  %v219_v1 = vld [vmem:[#allocation2 + $0x148] sm:$0xff] }
  0x37   :  { %517 = vmatprep.subr.bf16.mxu0 %v571_v0  ;;  %v527_v2 = vpack.c.bf16 %v219_v1, %v218_v63 }
  0x3a   :  { %519 = vmatpush3.bf16.msra.mxu0 %v518_v56 }
  0x3b   :  { %520 = vmatprep.subr.bf16.mxu0 %v571_v0 }
  0x3e   :  { %522 = vmatpush3.bf16.msra.mxu0 %v521_v59 }
  0x3f   :  { %523 = vmatprep.subr.bf16.mxu0 %v571_v0 }
  0x42   :  { %525 = vmatpush3.bf16.msra.mxu0 %v524_v62 }
  0x43   :  { %526 = vmatprep.subr.bf16.mxu0 %v571_v0 }
  0x46   :  { %528 = vmatpush3.bf16.msra.mxu0 %v527_v2 }
  0x47   :  { %529 = vmatprep.subr.bf16.mxu0 %v571_v0 }
  0x4a   :  { %531 = vmatpush3.bf16.msra.mxu0 %v530_v5 }
  0x4b   :  { %532 = vmatprep.subr.bf16.mxu0 %v571_v0 }
  0x4e   :  { %534 = vmatpush3.bf16.msra.mxu0 %v533_v8 }
  0x4f   :  { %535 = vmatprep.subr.bf16.mxu0 %v571_v0 }
  0x52   :  { %537 = vmatpush3.bf16.msra.mxu0 %v536_v16 }
 0x108   :  { %v113_v10 = vpop.f32.mrb[0].mxu0 }
 0x109   :  { %v114_v11 = vadd.f32 %v307_v9, %v113_v10  ;;  %v395_v12 = vpop.f32.mrb[1].mxu0 }
 0x10b   :  { %v117_v13 = vmax.f32 %v114_v11, 0.0 }
 0x10d   :  { %429 = vmatmul.mubr.f32.vlgmr.msra.gmra.mrb[0].mxu1 %v117_v13 }
 0x1e0   :  { %v205_v18 = vpop.f32.mrb[0].mxu1 }
 0x1e1   :  { %v206_v19 = vadd.f32 %v308_v17, %v205_v18  ;;  %v430_v20 = vpop.f32.mrb[1].mxu1 }
 0x1e3   :  { %v209_v21 = vmax.f32 %v206_v19, 0.0 }
 0x1e5   :  { %464 = vmatmul.mubr.f32.vlgmr.msra.gmra.mrb[2].mxu0 %v209_v21 }
 0x2b8   :  { %v297_v23 = vpop.f32.mrb[2].mxu0 }
 0x2b9   :  { %v298_v24 = vadd.f32 %v309_v22, %v297_v23  ;;  %v465_v0 = vpop.f32.mrb[3].mxu0 }
 0x2bb   :  { %301 = vst [vmem:[%s639_s2] sm:$0xff] %v298_v24 }
 0x2bc   :  { %306 = vsyncpa [#allocation3], 1 }

</bundles_post_ra>
